<compile_context>
chip_gen: v5e
topology: v5e:2x2
jax: 0.10.0
libtpu: 0.0.40
codegen_flags: <defaults>
</compile_context>

<pallas_src>
import functools

import jax
import jax.numpy as jnp
from jax.experimental import pallas as pl
from jax.experimental.pallas import tpu as pltpu

LANE = 128  # lane width of a vreg


def _round_up(n, m):
    return ((n + m - 1) // m) * m


def dqn_kernel(x_ref, w1_ref, b1_ref, w2_ref, b2_ref, w3_ref, b3_ref, o_ref):
    # x tile (TB, obs_p) bf16; weights bf16; biases f32; f32 MXU accumulation.
    h1 = jnp.dot(x_ref[...], w1_ref[...], preferred_element_type=jnp.float32)
    h1 = jnp.maximum(h1 + b1_ref[...], 0.0).astype(jnp.bfloat16)
    h2 = jnp.dot(h1, w2_ref[...], preferred_element_type=jnp.float32)
    h2 = jnp.maximum(h2 + b2_ref[...], 0.0).astype(jnp.bfloat16)
    h3 = jnp.dot(h2, w3_ref[...], preferred_element_type=jnp.float32)
    # NOTE: the spec module ends with nn.ReLU() after the last Linear, so the
    # trailing ReLU is intentional (matches the given forward semantics).
    o_ref[...] = jnp.maximum(h3 + b3_ref[...], 0.0).astype(o_ref.dtype)


def init_params(key, obs_size, hidden_size, n_actions):
    """PyTorch nn.Linear-style init (uniform +-1/sqrt(fan_in)), unpadded f32.
    Weights stored as (in_features, out_features); biases as (1, out_features)."""
    keys = jax.random.split(key, 6)

    def linear(kw, kb, fan_in, fan_out):
        bound = 1.0 / jnp.sqrt(float(fan_in))
        w = jax.random.uniform(kw, (fan_in, fan_out), jnp.float32, -bound, bound)
        b = jax.random.uniform(kb, (1, fan_out), jnp.float32, -bound, bound)
        return w, b

    w1, b1 = linear(keys[0], keys[1], obs_size, hidden_size)
    w2, b2 = linear(keys[2], keys[3], hidden_size, hidden_size)
    w3, b3 = linear(keys[4], keys[5], hidden_size, n_actions)
    return {"w1": w1, "b1": b1, "w2": w2, "b2": b2, "w3": w3, "b3": b3}


def prepare_params(params):
    """One-time layout plumbing: zero-pad every feature dim to a multiple of 128
    lanes and cast weights to bf16 (biases stay f32). Exactness is preserved
    because padded rows/cols are zero and ReLU(0) = 0."""
    obs, hid = params["w1"].shape
    act = params["w3"].shape[1]
    obs_p, hid_p, act_p = (_round_up(d, LANE) for d in (obs, hid, act))

    def pad_w(w, rows, cols):
        return jnp.pad(
            w, ((0, rows - w.shape[0]), (0, cols - w.shape[1]))
        ).astype(jnp.bfloat16)

    def pad_b(b, cols):
        return jnp.pad(b, ((0, 0), (0, cols - b.shape[1]))).astype(jnp.float32)

    return {
        "w1": pad_w(params["w1"], obs_p, hid_p), "b1": pad_b(params["b1"], hid_p),
        "w2": pad_w(params["w2"], hid_p, hid_p), "b2": pad_b(params["b2"], hid_p),
        "w3": pad_w(params["w3"], hid_p, act_p), "b3": pad_b(params["b3"], act_p),
        "dims": (obs, hid, act),  # original (unpadded) dims, python ints
    }


def dqn_forward(x, prepped, *, block_batch=256):
    """x: (batch, obs_size) f32. prepped: output of prepare_params."""
    obs, _, act = prepped["dims"]
    batch = x.shape[0]
    obs_p, hid_p = prepped["w1"].shape
    act_p = prepped["w3"].shape[1]

    # Batch tile: multiple of 16 sublanes (bf16 packing), capped by block_batch.
    # For large batches keep TB in the 256-1024 range so DMA of x tiles pipelines
    # against compute while staying well inside VMEM on v7x (64 MiB).
    tb = min(block_batch, _round_up(batch, 16))
    batch_p = _round_up(batch, tb)
    grid = (batch_p // tb,)

    x_p = jnp.pad(
        x, ((0, batch_p - batch), (0, obs_p - x.shape[1]))
    ).astype(jnp.bfloat16)

    resident = lambda i: (0, 0)  # weights/biases: same block every grid step

    flops = 2 * batch_p * (obs_p * hid_p + hid_p * hid_p + hid_p * act_p)
    bytes_accessed = (
        x_p.size * 2
        + sum(prepped[k].size * 2 for k in ("w1", "w2", "w3"))
        + sum(prepped[k].size * 4 for k in ("b1", "b2", "b3"))
        + batch_p * act_p * 4
    )

    out_p = pl.pallas_call(
        dqn_kernel,
        out_shape=jax.ShapeDtypeStruct((batch_p, act_p), jnp.float32),
        grid=grid,
        in_specs=[
            pl.BlockSpec((tb, obs_p), lambda i: (i, 0)),   # x: tiled over batch
            pl.BlockSpec((obs_p, hid_p), resident),        # w1 (bf16, resident)
            pl.BlockSpec((1, hid_p), resident),            # b1 (f32)
            pl.BlockSpec((hid_p, hid_p), resident),        # w2
            pl.BlockSpec((1, hid_p), resident),            # b2
            pl.BlockSpec((hid_p, act_p), resident),        # w3
            pl.BlockSpec((1, act_p), resident),            # b3
        ],
        out_specs=pl.BlockSpec((tb, act_p), lambda i: (i, 0)),
        compiler_params=pltpu.CompilerParams(
            dimension_semantics=("parallel",),  # batch tiles -> both TCs on v7x
        ),
        cost_estimate=pl.CostEstimate(
            flops=flops, transcendentals=0, bytes_accessed=bytes_accessed
        ),
    )(x_p, prepped["w1"], prepped["b1"], prepped["w2"], prepped["b2"],
      prepped["w3"], prepped["b3"])

    # Slice off batch padding and the padded (zero) action lanes.
    return out_p[:batch, :act]


def dqn_reference(x, p):
    """f32 reference matching the PyTorch module (ReLU after every Linear)."""
    h = jnp.maximum(x @ p["w1"] + p["b1"], 0.0)
    h = jnp.maximum(h @ p["w2"] + p["b2"], 0.0)
    return jnp.maximum(h @ p["w3"] + p["b3"], 0.0)


if __name__ == "__main__":
    obs_size, hidden_size, n_actions = 16, 32, 4
    batch = 8

    key = jax.random.PRNGKey(0)
    kx, kp = jax.random.split(key)
    x = jax.random.normal(kx, (batch, obs_size), jnp.float32)
    params = init_params(kp, obs_size, hidden_size, n_actions)
    prepped = prepare_params(params)

    out = dqn_forward(x, prepped)
    out = jax.block_until_ready(out)

    ref = dqn_reference(x, params)
    assert out.shape == (batch, n_actions)
    # bf16 weight/input cast with f32 accumulation -> allow ~1% deviation vs f32 ref.
    assert jnp.allclose(out, ref, atol=2e-2, rtol=2e-2), "mismatch vs reference"

    print("KERNEL_OK")
</pallas_src>

<mosaic_0001>
module attributes {stable_mosaic.version = 11 : i64} {
  func.func @dqn_kernel(%arg0: i32, %arg1: memref<16x128xbf16, #tpu.memory_space<vmem>>, %arg2: memref<128x128xbf16, #tpu.memory_space<vmem>>, %arg3: memref<1x128xf32, #tpu.memory_space<vmem>>, %arg4: memref<128x128xbf16, #tpu.memory_space<vmem>>, %arg5: memref<1x128xf32, #tpu.memory_space<vmem>>, %arg6: memref<128x128xbf16, #tpu.memory_space<vmem>>, %arg7: memref<1x128xf32, #tpu.memory_space<vmem>>, %arg8: memref<16x128xf32, #tpu.memory_space<vmem>>) attributes {dimension_semantics = [#tpu.dimension_semantics<parallel>], iteration_bounds = array<i64: 1>, scalar_prefetch = 0 : i64, scratch_operands = 0 : i64, tpu.core_type = #tpu.core_type<tc>, window_params = [{transform_indices = @transform_0, window_bounds = array<i64: 16, 128>}, {pipeline_mode = #tpu.pipeline_mode<synchronous>, transform_indices = @transform_1, window_bounds = array<i64: 128, 128>}, {pipeline_mode = #tpu.pipeline_mode<synchronous>, transform_indices = @transform_2, window_bounds = array<i64: 1, 128>}, {pipeline_mode = #tpu.pipeline_mode<synchronous>, transform_indices = @transform_3, window_bounds = array<i64: 128, 128>}, {pipeline_mode = #tpu.pipeline_mode<synchronous>, transform_indices = @transform_4, window_bounds = array<i64: 1, 128>}, {pipeline_mode = #tpu.pipeline_mode<synchronous>, transform_indices = @transform_5, window_bounds = array<i64: 128, 128>}, {pipeline_mode = #tpu.pipeline_mode<synchronous>, transform_indices = @transform_6, window_bounds = array<i64: 1, 128>}, {transform_indices = @transform_7, window_bounds = array<i64: 16, 128>}]} {
    %c0 = arith.constant 0 : index
    %c0_0 = arith.constant 0 : index
    %0 = vector.load %arg1[%c0, %c0_0] : memref<16x128xbf16, #tpu.memory_space<vmem>>, vector<16x128xbf16>
    %c0_1 = arith.constant 0 : index
    %c0_2 = arith.constant 0 : index
    %1 = vector.load %arg2[%c0_1, %c0_2] : memref<128x128xbf16, #tpu.memory_space<vmem>>, vector<128x128xbf16>
    %cst = arith.constant dense<0.000000e+00> : vector<16x128xf32>
    %2 = tpu.matmul %0, %1, %cst {dimension_numbers = #tpu.dot_dimension_numbers<[1], [0], [0], [1], [0, 0, 1, 1], [], []>} : vector<16x128xbf16>, vector<128x128xbf16>, vector<16x128xf32> -> vector<16x128xf32>
    %c0_3 = arith.constant 0 : index
    %c0_4 = arith.constant 0 : index
    %3 = vector.load %arg3[%c0_3, %c0_4] : memref<1x128xf32, #tpu.memory_space<vmem>>, vector<1x128xf32>
    %4 = vector.broadcast %3 : vector<1x128xf32> to vector<16x128xf32>
    %5 = arith.addf %2, %4 : vector<16x128xf32>
    %cst_5 = arith.constant 0.000000e+00 : f32
    %6 = vector.broadcast %cst_5 : f32 to vector<16x128xf32>
    %7 = arith.maximumf %5, %6 : vector<16x128xf32>
    %8 = arith.truncf %7 : vector<16x128xf32> to vector<16x128xbf16>
    %c0_6 = arith.constant 0 : index
    %c0_7 = arith.constant 0 : index
    %9 = vector.load %arg4[%c0_6, %c0_7] : memref<128x128xbf16, #tpu.memory_space<vmem>>, vector<128x128xbf16>
    %cst_8 = arith.constant dense<0.000000e+00> : vector<16x128xf32>
    %10 = tpu.matmul %8, %9, %cst_8 {dimension_numbers = #tpu.dot_dimension_numbers<[1], [0], [0], [1], [0, 0, 1, 1], [], []>} : vector<16x128xbf16>, vector<128x128xbf16>, vector<16x128xf32> -> vector<16x128xf32>
    %c0_9 = arith.constant 0 : index
    %c0_10 = arith.constant 0 : index
    %11 = vector.load %arg5[%c0_9, %c0_10] : memref<1x128xf32, #tpu.memory_space<vmem>>, vector<1x128xf32>
    %12 = vector.broadcast %11 : vector<1x128xf32> to vector<16x128xf32>
    %13 = arith.addf %10, %12 : vector<16x128xf32>
    %cst_11 = arith.constant 0.000000e+00 : f32
    %14 = vector.broadcast %cst_11 : f32 to vector<16x128xf32>
    %15 = arith.maximumf %13, %14 : vector<16x128xf32>
    %16 = arith.truncf %15 : vector<16x128xf32> to vector<16x128xbf16>
    %c0_12 = arith.constant 0 : index
    %c0_13 = arith.constant 0 : index
    %17 = vector.load %arg6[%c0_12, %c0_13] : memref<128x128xbf16, #tpu.memory_space<vmem>>, vector<128x128xbf16>
    %cst_14 = arith.constant dense<0.000000e+00> : vector<16x128xf32>
    %18 = tpu.matmul %16, %17, %cst_14 {dimension_numbers = #tpu.dot_dimension_numbers<[1], [0], [0], [1], [0, 0, 1, 1], [], []>} : vector<16x128xbf16>, vector<128x128xbf16>, vector<16x128xf32> -> vector<16x128xf32>
    %c0_15 = arith.constant 0 : index
    %c0_16 = arith.constant 0 : index
    %19 = vector.load %arg7[%c0_15, %c0_16] : memref<1x128xf32, #tpu.memory_space<vmem>>, vector<1x128xf32>
    %20 = vector.broadcast %19 : vector<1x128xf32> to vector<16x128xf32>
    %21 = arith.addf %18, %20 : vector<16x128xf32>
    %cst_17 = arith.constant 0.000000e+00 : f32
    %22 = vector.broadcast %cst_17 : f32 to vector<16x128xf32>
    %23 = arith.maximumf %21, %22 : vector<16x128xf32>
    %c0_18 = arith.constant 0 : index
    %c0_19 = arith.constant 0 : index
    %24 = vector.load %arg8[%c0_18, %c0_19] : memref<16x128xf32, #tpu.memory_space<vmem>>, vector<16x128xf32>
    tpu.vector_store %arg8[%c0_18, %c0_19], %23 {strides = array<i32>} : memref<16x128xf32, #tpu.memory_space<vmem>>, vector<16x128xf32>,
    return
  }
  func.func @transform_0(%arg0: i32) -> (i32, i32) {
    %c0_i32 = arith.constant 0 : i32
    %c0_i32_0 = arith.constant 0 : i32
    return %arg0, %c0_i32 : i32, i32
  }
  func.func @transform_1(%arg0: i32) -> (i32, i32) {
    %c0_i32 = arith.constant 0 : i32
    %c0_i32_0 = arith.constant 0 : i32
    %c0_i32_1 = arith.constant 0 : i32
    return %c0_i32, %c0_i32_0 : i32, i32
  }
  func.func @transform_2(%arg0: i32) -> (i32, i32) {
    %c0_i32 = arith.constant 0 : i32
    %c0_i32_0 = arith.constant 0 : i32
    %c0_i32_1 = arith.constant 0 : i32
    return %c0_i32, %c0_i32_0 : i32, i32
  }
  func.func @transform_3(%arg0: i32) -> (i32, i32) {
    %c0_i32 = arith.constant 0 : i32
    %c0_i32_0 = arith.constant 0 : i32
    %c0_i32_1 = arith.constant 0 : i32
    return %c0_i32, %c0_i32_0 : i32, i32
  }
  func.func @transform_4(%arg0: i32) -> (i32, i32) {
    %c0_i32 = arith.constant 0 : i32
    %c0_i32_0 = arith.constant 0 : i32
    %c0_i32_1 = arith.constant 0 : i32
    return %c0_i32, %c0_i32_0 : i32, i32
  }
  func.func @transform_5(%arg0: i32) -> (i32, i32) {
    %c0_i32 = arith.constant 0 : i32
    %c0_i32_0 = arith.constant 0 : i32
    %c0_i32_1 = arith.constant 0 : i32
    return %c0_i32, %c0_i32_0 : i32, i32
  }
  func.func @transform_6(%arg0: i32) -> (i32, i32) {
    %c0_i32 = arith.constant 0 : i32
    %c0_i32_0 = arith.constant 0 : i32
    %c0_i32_1 = arith.constant 0 : i32
    return %c0_i32, %c0_i32_0 : i32, i32
  }
  func.func @transform_7(%arg0: i32) -> (i32, i32) {
    %c0_i32 = arith.constant 0 : i32
    %c0_i32_0 = arith.constant 0 : i32
    return %arg0, %c0_i32 : i32, i32
  }
}

</mosaic_0001>

<bundles_post_ra>
// kernel: tpu_custom_call.1
= control target key start
LH: loop header
LB: loop body
LE: loop exit
PB: predicated region body
PF: predicated region fallthrough
CT: control target
= control target key end

     0   :  { %12 = vsyncpa [#allocation3], 0  ;;  %s713_s0 = inlined_call_operand.hbm [shape: bf16[16,128], index: 0, kind: input, shape index: {}]   ;;  %s714_s1 = inlined_call_operand.hbm [shape: bf16[128,128], index: 1, kind: input, shape index: {}]   ;;  %s715_s2 = inlined_call_operand.vmem [shape: f32[1,128], index: 2, kind: input, shape index: {}]   ;;  %s716_s3 = inlined_call_operand.hbm [shape: bf16[128,128], index: 3, kind: input, shape index: {}]   ;;  %s717_s4 = inlined_call_operand.vmem [shape: f32[1,128], index: 4, kind: input, shape index: {}]   ;;  %s718_s5 = inlined_call_operand.hbm [shape: bf16[128,128], index: 5, kind: input, shape index: {}]   ;;  %s719_s6 = inlined_call_operand.vmem [shape: f32[1,128], index: 6, kind: input, shape index: {}]   ;;  %s720_s7 = inlined_call_operand.hbm [shape: f32[16,128], index: 7, kind: output, shape index: {}]  }
   0x1   :  { %13 = vsyncpa [#allocation6], 0 }
   0x2   :  { %14 = vsyncpa [#allocation9], 0 }
   0x3   :  { %15 = vsyncpa [#allocation4], 0  ;;  %s33_s26 = sshll.u32 %s714_s1, 4  ;;  %s640_s27 = smov [#allocation5]   ;;  %s34_s26 = int_to_ptr.hbm [resolvable:$true] %s33_s26 }
   0x4   :  { %s35_s28 = sshll.u32 %s640_s27, 4  ;;  %s20_s8 = sshll.u32 %s713_s0, 4  ;;  %s36_s28 = int_to_ptr.vmem [resolvable:$true] %s35_s28  ;;  %s21_s8 = int_to_ptr.hbm [resolvable:$true] %s20_s8 }
   0x5   :  { %s641_s9 = smov 64   ;;  %s642_s10 = smov 4  }
   0x6   :  { %41 = dma.hbm_to_vmem [thread:$0]  %s34_s26, 1024, %s36_s28, [#allocation6], %s641_s9, %s641_s9, %s642_s10  }
   0x7   :  { %s643_s11 = smov [#allocation2]   ;;  %s48_s15 = sshll.u32 %s716_s3, 4  ;;  %s49_s15 = int_to_ptr.hbm [resolvable:$true] %s48_s15 }
   0x8   :  { %s22_s12 = sshll.u32 %s643_s11, 4  ;;  %s63_s17 = sshll.u32 %s718_s5, 4  ;;  %s23_s12 = int_to_ptr.vmem [resolvable:$true] %s22_s12  ;;  %s64_s17 = int_to_ptr.hbm [resolvable:$true] %s63_s17 }
   0x9   :  { %28 = dma.hbm_to_vmem [thread:$0]  %s21_s8, 128, %s23_s12, [#allocation3], %s641_s9, %s641_s9, %s642_s10  }
   0xa   :  { %s644_s18 = smov [#allocation7]   ;;  %s645_s0 = smov [#allocation8]  }
   0xb   :  { %s50_s19 = sshll.u32 %s644_s18, 4  ;;  %s65_s20 = sshll.u32 %s645_s0, 4  ;;  %s51_s19 = int_to_ptr.vmem [resolvable:$true] %s50_s19  ;;  %s66_s20 = int_to_ptr.vmem [resolvable:$true] %s65_s20 }
   0xc   :  { %56 = dma.hbm_to_vmem [thread:$0]  %s49_s15, 1024, %s51_s19, [#allocation6], %s641_s9, %s641_s9, %s642_s10  }
   0xd   :  { %71 = dma.hbm_to_vmem [thread:$0]  %s64_s17, 1024, %s66_s20, [#allocation9], %s641_s9, %s641_s9, %s642_s10  }
   0xe   :  { %632 = dma.done.wait [#allocation3], 128  }
   0xf   :  { %633 = vsyncadd [#allocation3], 4294967168 }
  0x10   :  { %634 = dma.done.wait [#allocation6], 2048  }
  0x11   :  { %635 = vsyncadd [#allocation6], 4294965248 }
  0x12   :  { %636 = dma.done.wait [#allocation9], 1024  }
  0x13   :  { %637 = vsyncadd [#allocation9], 4294966272  ;;  %v483_v0 = vld [vmem:[#allocation5 + $0x38] sm:$0xff]  ;;  %v482_v1 = vld [vmem:[#allocation5 + $0x30] sm:$0xff]  ;;  %s646_s24 = smov [#allocation10]   ;;  %s647_s28 = smov 128  }
  0x14   :  { %166 = vmatpush.bf16.msra.mxu0 %v483_v0  ;;  %v491_v2 = vld [vmem:[#allocation7 + $0x38] sm:$0xff]  ;;  %v490_v3 = vld [vmem:[#allocation7 + $0x30] sm:$0xff]  ;;  %v481_v4 = vld [vmem:[#allocation5 + $0x28] sm:$0xff]  ;;  %s358_s25 = sshll.u32 %s646_s24, 4  ;;  %s648_s29 = smov 8   ;;  %s359_s25 = int_to_ptr.vmem [resolvable:$true] %s358_s25 }
  0x15   :  { %251 = vmatpush.bf16.msra.mxu1 %v491_v2  ;;  %v489_v5 = vld [vmem:[#allocation7 + $0x28] sm:$0xff]  ;;  %v480_v6 = vld [vmem:[#allocation5 + $0x20] sm:$0xff]  ;;  %v479_v8 = vld [vmem:[#allocation5 + $0x18] sm:$0xff] }
  0x16   :  { %v488_v7 = vld [vmem:[#allocation7 + $0x20] sm:$0xff]  ;;  %v478_v9 = vld [vmem:[#allocation5 + $0x10] sm:$0xff]  ;;  %v477_v10 = vld [vmem:[#allocation5 + $0x8] sm:$0xff] }
  0x17   :  { %v476_v11 = vld [vmem:[#allocation5] sm:$0xff]  ;;  %v475_v12 = vld [vmem:[#allocation2] sm:$0xff]  ;;  %v486_v14 = vld [vmem:[#allocation7 + $0x10] sm:$0xff] }
  0x18   :  { %167 = vmatpush.bf16.msra.mxu0 %v482_v1  ;;  %v487_v13 = vld [vmem:[#allocation7 + $0x18] sm:$0xff]  ;;  %v485_v15 = vld [vmem:[#allocation7 + $0x8] sm:$0xff]  ;;  %v484_v16 = vld [vmem:[#allocation7] sm:$0xff] }
  0x19   :  { %252 = vmatpush.bf16.msra.mxu1 %v490_v3  ;;  %v499_v17 = vld [vmem:[#allocation8 + $0x38] sm:$0xff]  ;;  %v498_v18 = vld [vmem:[#allocation8 + $0x30] sm:$0xff]  ;;  %v497_v19 = vld [vmem:[#allocation8 + $0x28] sm:$0xff] }
  0x1a   :  { %336 = vmatpush.bf16.msra.mxu2 %v499_v17  ;;  %v496_v20 = vld [vmem:[#allocation8 + $0x20] sm:$0xff]  ;;  %v509_v22 = vld [vmem:[%s715_s2] ss:$0 sm:$0xff]  ;;  %v494_v30 = vld [vmem:[#allocation8 + $0x10] sm:$0xff] }
  0x1b   :  { %v495_v29 = vld [vmem:[#allocation8 + $0x18] sm:$0xff]  ;;  %v493_v31 = vld [vmem:[#allocation8 + $0x8] sm:$0xff]  ;;  %v492_v32 = vld [vmem:[#allocation8] sm:$0xff] }
  0x1c   :  { %168 = vmatpush.bf16.msra.mxu0 %v481_v4  ;;  %v510_v34 = vld [vmem:[%s717_s4] ss:$0 sm:$0xff]  ;;  %s360_s4 = sshll.u32 %s720_s7, 4  ;;  %s361_s4 = int_to_ptr.hbm [resolvable:$true] %s360_s4 }
  0x1d   :  { %253 = vmatpush.bf16.msra.mxu1 %v489_v5  ;;  %v511_v41 = vld [vmem:[%s719_s6] ss:$0 sm:$0xff] }
  0x1e   :  { %337 = vmatpush.bf16.msra.mxu2 %v498_v18 }
  0x20   :  { %169 = vmatpush.bf16.msra.mxu0 %v480_v6 }
  0x21   :  { %254 = vmatpush.bf16.msra.mxu1 %v488_v7 }
  0x22   :  { %338 = vmatpush.bf16.msra.mxu2 %v497_v19 }
  0x24   :  { %170 = vmatpush.bf16.msra.mxu0 %v479_v8 }
  0x25   :  { %255 = vmatpush.bf16.msra.mxu1 %v487_v13 }
  0x26   :  { %339 = vmatpush.bf16.msra.mxu2 %v496_v20 }
  0x28   :  { %171 = vmatpush.bf16.msra.mxu0 %v478_v9 }
  0x29   :  { %256 = vmatpush.bf16.msra.mxu1 %v486_v14 }
  0x2a   :  { %340 = vmatpush.bf16.msra.mxu2 %v495_v29 }
  0x2c   :  { %172 = vmatpush.bf16.msra.mxu0 %v477_v10 }
  0x2d   :  { %257 = vmatpush.bf16.msra.mxu1 %v485_v15 }
  0x2e   :  { %341 = vmatpush.bf16.msra.mxu2 %v494_v30 }
  0x30   :  { %173 = vmatpush.bf16.msra.mxu0 %v476_v11 }
  0x31   :  { %258 = vmatpush.bf16.msra.mxu1 %v484_v16 }
  0x32   :  { %342 = vmatpush.bf16.msra.mxu2 %v493_v31 }
  0x33   :  { %174 = vmatmul.bf16.vlgmr.msra.gmra.mxu0 %v475_v12 }
  0x36   :  { %343 = vmatpush.bf16.msra.mxu2 %v492_v32 }
  0xb0   :  { %v175_v21 = vpop.f32.mrf.mxu0 }
  0xb1   :  { %v176_v23 = vadd.f32 %v509_v22, %v175_v21 }
  0xb3   :  { %v180_v26 = vmax.f32 %v176_v23, 0.0 }
  0xb8   :  { %v177_v24 = vpop.f32.mrf.mxu0 }
  0xb9   :  { %v178_v25 = vadd.f32 %v509_v22, %v177_v24 }
  0xbb   :  { %v181_v27 = vmax.f32 %v178_v25, 0.0 }
  0xbd   :  { %v182_v28 = vpack.c.bf16 %v181_v27, %v180_v26 }
  0xbf   :  { %259 = vmatmul.bf16.vlgmr.msra.gmra.mxu1 %v182_v28 }
 0x13c   :  { %v260_v33 = vpop.f32.mrf.mxu1 }
 0x13d   :  { %v261_v35 = vadd.f32 %v510_v34, %v260_v33 }
 0x13f   :  { %v265_v38 = vmax.f32 %v261_v35, 0.0 }
 0x144   :  { %v262_v36 = vpop.f32.mrf.mxu1 }
 0x145   :  { %v263_v37 = vadd.f32 %v510_v34, %v262_v36 }
 0x147   :  { %v266_v39 = vmax.f32 %v263_v37, 0.0 }
 0x149   :  { %v267_v40 = vpack.c.bf16 %v266_v39, %v265_v38 }
 0x14b   :  { %344 = vmatmul.bf16.vlgmr.msra.gmra.mxu2 %v267_v40 }
 0x1ce   :  { %v345_v42 = vpop.f32.mrf.mxu2 }
 0x1cf   :  { %v346_v43 = vadd.f32 %v511_v41, %v345_v42 }
 0x1d1   :  { %v350_v44 = vmax.f32 %v346_v43, 0.0 }
 0x1d3   :  { %352 = vst [vmem:[#allocation10] sm:$0xff] %v350_v44 }
 0x1d6   :  { %v347_v45 = vpop.f32.mrf.mxu2 }
 0x1d7   :  { %v348_v46 = vadd.f32 %v511_v41, %v347_v45 }
 0x1d9   :  { %v351_v47 = vmax.f32 %v348_v46, 0.0 }
 0x1db   :  { %353 = vst [vmem:[#allocation10 + $0x8] sm:$0xff] %v351_v47 }
 0x1dc   :  { %366 = dma.vmem_to_hbm [thread:$0]  %s359_s25, 256, %s361_s4, [#allocation4], %s647_s28, %s647_s28, %s648_s29  }
 0x1dd   :  { %638 = dma.done.wait [#allocation4], 256  }
 0x1de   :  { %639 = vsyncadd [#allocation4], 4294967040 }
 0x1df   :  { %371 = vsyncpa [#allocation3], 1 }
 0x1e0   :  { %372 = vsyncpa [#allocation6], 1 }
 0x1e1   :  { %373 = vsyncpa [#allocation9], 1 }
 0x1e2   :  { %374 = vsyncpa [#allocation4], 1 }

</bundles_post_ra>
